<compile_context>
chip_gen: v6e
topology: v6e:2x2x1
jax: 0.10.0
libtpu: 0.0.40
codegen_flags: <defaults>
</compile_context>

<pallas_src>
import functools

import jax
import jax.numpy as jnp
from jax.experimental import pallas as pl
from jax.experimental.pallas import tpu as pltpu


def _action_net_kernel(x_ref, u_ref,
                       w1_ref, b1_ref, w2_ref, b2_ref, w3_ref, b3_ref,
                       policy_ref, packed_ref):
    # Feature-major inside the kernel: batch rides the 128-lane axis.
    x = x_ref[...]                                                  # (TILE_B, IN)
    u = u_ref[...]                                                  # (1, TILE_B) uniform [0,1)

    # MlpExtractor: Linear -> tanh -> Linear -> tanh  (torch (out, in) weights).
    # First matmul contracts x's last dim directly (== W1 @ x^T, no transpose op).
    h1 = jnp.tanh(jax.lax.dot_general(
        w1_ref[...], x, (((1,), (1,)), ((), ())),
        preferred_element_type=jnp.float32) + b1_ref[...])          # (H, TILE_B)
    h2 = jnp.tanh(jnp.dot(w2_ref[...], h1,
                          preferred_element_type=jnp.float32) + b2_ref[...])
    logits = jnp.dot(w3_ref[...], h2,
                     preferred_element_type=jnp.float32) + b3_ref[...]   # (A, TILE_B)

    A, TB = logits.shape

    # Numerically-stable softmax over the action (sublane) axis. Exact divide.
    m = jnp.max(logits, axis=0, keepdims=True)                      # (1, TILE_B)
    z = logits - m
    e = jnp.exp(z)
    s = jnp.sum(e, axis=0, keepdims=True)
    inv_s = 1.0 / s
    log_s = jnp.log(s)
    probs = e * inv_s                                               # (A, TILE_B)

    # entropy = -sum p log p = log_s - sum(e*z)/s   (log_probs never materialized)
    entropy = log_s - jnp.sum(e * z, axis=0, keepdims=True) * inv_s  # (1, TILE_B)

    # Inverse-CDF categorical sampling: cdf via tiny lower-triangular matmul.
    ri = jax.lax.broadcasted_iota(jnp.int32, (A, A), 0)
    ci = jax.lax.broadcasted_iota(jnp.int32, (A, A), 1)
    tri = (ci <= ri).astype(jnp.float32)                            # (A, A) lower-tri ones
    cdf = jnp.dot(tri, probs, preferred_element_type=jnp.float32)   # (A, TILE_B)
    action = jnp.sum((u >= cdf).astype(jnp.int32), axis=0, keepdims=True)
    action = jnp.minimum(action, A - 1)                             # (1, TILE_B) int32

    # log_prob(action) = z[action] - log_s   (select + max gather)
    idx = jax.lax.broadcasted_iota(jnp.int32, (A, TB), 0)
    zg = jnp.max(jnp.where(idx == action, z, -jnp.inf), axis=0, keepdims=True)
    log_prob = zg - log_s                                           # (1, TILE_B)

    # Outputs: policy batch-major (one in-kernel transpose, XLU slot),
    # per-row scalars packed lane-dense into an 8-sublane slab (unmasked vst).
    policy_ref[...] = probs.T.astype(policy_ref.dtype)              # (TILE_B, A)

    row = jax.lax.broadcasted_iota(jnp.int32, (8, TB), 0)
    action_f = action.astype(jnp.float32)                           # exact for A < 2^24
    packed_ref[...] = jnp.where(row == 0, action_f,
                                jnp.where(row == 1, log_prob,
                                          jnp.where(row == 2, entropy, 0.0)))


@functools.partial(jax.jit, static_argnames=("tile_b",))
def action_net_forward(x, params, key, *, tile_b=256):
    """Fused ActionNet forward. Returns (action, policy, log_prob, entropy)."""
    B, in_dim = x.shape
    H = params["w1"].shape[0]
    A = params["w3"].shape[0]

    nb = pl.cdiv(B, tile_b)
    b_pad = nb * tile_b
    if b_pad != B:
        x = jnp.pad(x, ((0, b_pad - B), (0, 0)))

    # One uniform per batch element, generated once outside the kernel.
    u = jax.random.uniform(key, (1, b_pad), jnp.float32)

    def resident(shape):                                            # weights stay VMEM-resident
        return pl.BlockSpec(shape, lambda i: (0, 0))

    flops = 2 * b_pad * (in_dim * H + H * H + H * A + A * A)
    transcendentals = b_pad * (2 * H + A + 2)
    bytes_accessed = 4 * (b_pad * (in_dim + 1 + A + 8)
                          + in_dim * H + H * H + H * A + 2 * H + A)

    policy, packed = pl.pallas_call(
        _action_net_kernel,
        grid=(nb,),
        in_specs=[
            pl.BlockSpec((tile_b, in_dim), lambda i: (i, 0)),       # x batch-major (pipelined)
            pl.BlockSpec((1, tile_b), lambda i: (0, i)),            # uniforms
            resident((H, in_dim)), resident((H, 1)),                # layer 1
            resident((H, H)), resident((H, 1)),                     # layer 2
            resident((A, H)), resident((A, 1)),                     # fc_action
        ],
        out_specs=(
            pl.BlockSpec((tile_b, A), lambda i: (i, 0)),            # policy (B, A)
            pl.BlockSpec((8, tile_b), lambda i: (0, i)),            # packed scalars (8, B)
        ),
        out_shape=(
            jax.ShapeDtypeStruct((b_pad, A), jnp.float32),
            jax.ShapeDtypeStruct((8, b_pad), jnp.float32),
        ),
        compiler_params=pltpu.CompilerParams(
            dimension_semantics=("parallel",)),
        cost_estimate=pl.CostEstimate(
            flops=flops,
            bytes_accessed=bytes_accessed,
            transcendentals=transcendentals),
    )(x, u,
      params["w1"], params["b1"],
      params["w2"], params["b2"],
      params["w3"], params["b3"])

    policy = policy[:B]                                             # already batch-major
    action = packed[0, :B].astype(jnp.int32)
    log_prob = packed[1, :B]
    entropy = packed[2, :B]
    return action, policy, log_prob, entropy


def init_params(key, input_dim, hidden_dim, output_dim):
    """Weights in torch nn.Linear layout: W is (out, in), bias stored as (out, 1)."""
    k1, k2, k3, k4, k5, k6 = jax.random.split(key, 6)
    scale = 0.1
    return {
        "w1": scale * jax.random.normal(k1, (hidden_dim, input_dim), jnp.float32),
        "b1": scale * jax.random.normal(k4, (hidden_dim, 1), jnp.float32),
        "w2": scale * jax.random.normal(k2, (hidden_dim, hidden_dim), jnp.float32),
        "b2": scale * jax.random.normal(k5, (hidden_dim, 1), jnp.float32),
        "w3": scale * jax.random.normal(k3, (output_dim, hidden_dim), jnp.float32),
        "b3": scale * jax.random.normal(k6, (output_dim, 1), jnp.float32),
    }


if __name__ == "__main__":
    B, INPUT_DIM, HIDDEN_DIM, OUTPUT_DIM = 256, 16, 32, 8
    TILE_B = 128  # 2 grid steps: exercises the pipelined batch grid / v7x 2-TC sharding

    key = jax.random.PRNGKey(0)
    kp, kx, ks = jax.random.split(key, 3)

    params = init_params(kp, INPUT_DIM, HIDDEN_DIM, OUTPUT_DIM)
    x = jax.random.normal(kx, (B, INPUT_DIM), jnp.float32)

    action, policy, log_prob, entropy = action_net_forward(
        x, params, ks, tile_b=TILE_B)
    jax.block_until_ready((action, policy, log_prob, entropy))

    # Pure-JAX reference for the deterministic parts of the forward.
    h1 = jnp.tanh(x @ params["w1"].T + params["b1"].T)
    h2 = jnp.tanh(h1 @ params["w2"].T + params["b2"].T)
    logits = h2 @ params["w3"].T + params["b3"].T
    ref_policy = jax.nn.softmax(logits, axis=-1)
    ref_entropy = -jnp.sum(ref_policy * jnp.log(ref_policy), axis=-1)

    assert action.shape == (B,) and policy.shape == (B, OUTPUT_DIM)
    assert log_prob.shape == (B,) and entropy.shape == (B,)
    assert bool(jnp.all((action >= 0) & (action < OUTPUT_DIM)))
    assert jnp.allclose(jnp.sum(policy, axis=-1), 1.0, atol=1e-4)
    assert jnp.allclose(policy, ref_policy, atol=2e-4)
    assert jnp.allclose(entropy, ref_entropy, atol=2e-4)
    gathered = jnp.log(ref_policy[jnp.arange(B), action])
    assert jnp.allclose(log_prob, gathered, atol=2e-4)

    print("KERNEL_OK")
</pallas_src>

<mosaic_0001>
module attributes {stable_mosaic.version = 11 : i64} {
  func.func @_action_net_kernel(%arg0: i32, %arg1: memref<128x16xf32, #tpu.memory_space<vmem>>, %arg2: memref<1x128xf32, #tpu.memory_space<vmem>>, %arg3: memref<32x16xf32, #tpu.memory_space<vmem>>, %arg4: memref<32x1xf32, #tpu.memory_space<vmem>>, %arg5: memref<32x32xf32, #tpu.memory_space<vmem>>, %arg6: memref<32x1xf32, #tpu.memory_space<vmem>>, %arg7: memref<8x32xf32, #tpu.memory_space<vmem>>, %arg8: memref<8x1xf32, #tpu.memory_space<vmem>>, %arg9: memref<128x8xf32, #tpu.memory_space<vmem>>, %arg10: memref<8x128xf32, #tpu.memory_space<vmem>>) attributes {dimension_semantics = [#tpu.dimension_semantics<parallel>], iteration_bounds = array<i64: 2>, scalar_prefetch = 0 : i64, scratch_operands = 0 : i64, tpu.core_type = #tpu.core_type<tc>, window_params = [{transform_indices = @transform_0, window_bounds = array<i64: 128, 16>}, {transform_indices = @transform_1, window_bounds = array<i64: 1, 128>}, {pipeline_mode = #tpu.pipeline_mode<synchronous>, transform_indices = @transform_2, window_bounds = array<i64: 32, 16>}, {pipeline_mode = #tpu.pipeline_mode<synchronous>, transform_indices = @transform_3, window_bounds = array<i64: 32, 1>}, {pipeline_mode = #tpu.pipeline_mode<synchronous>, transform_indices = @transform_4, window_bounds = array<i64: 32, 32>}, {pipeline_mode = #tpu.pipeline_mode<synchronous>, transform_indices = @transform_5, window_bounds = array<i64: 32, 1>}, {pipeline_mode = #tpu.pipeline_mode<synchronous>, transform_indices = @transform_6, window_bounds = array<i64: 8, 32>}, {pipeline_mode = #tpu.pipeline_mode<synchronous>, transform_indices = @transform_7, window_bounds = array<i64: 8, 1>}, {transform_indices = @transform_8, window_bounds = array<i64: 128, 8>}, {transform_indices = @transform_9, window_bounds = array<i64: 8, 128>}]} {
    %c0 = arith.constant 0 : index
    %c0_0 = arith.constant 0 : index
    %0 = vector.load %arg1[%c0, %c0_0] : memref<128x16xf32, #tpu.memory_space<vmem>>, vector<128x16xf32>
    %c0_1 = arith.constant 0 : index
    %c0_2 = arith.constant 0 : index
    %1 = vector.load %arg2[%c0_1, %c0_2] : memref<1x128xf32, #tpu.memory_space<vmem>>, vector<1x128xf32>
    %c0_3 = arith.constant 0 : index
    %c0_4 = arith.constant 0 : index
    %2 = vector.load %arg3[%c0_3, %c0_4] : memref<32x16xf32, #tpu.memory_space<vmem>>, vector<32x16xf32>
    %cst = arith.constant dense<0.000000e+00> : vector<32x128xf32>
    %3 = tpu.matmul %2, %0, %cst {dimension_numbers = #tpu.dot_dimension_numbers<[1], [1], [0], [0], [0, 0, 1, 0], [], []>} : vector<32x16xf32>, vector<128x16xf32>, vector<32x128xf32> -> vector<32x128xf32>
    %c0_5 = arith.constant 0 : index
    %c0_6 = arith.constant 0 : index
    %4 = vector.load %arg4[%c0_5, %c0_6] : memref<32x1xf32, #tpu.memory_space<vmem>>, vector<32x1xf32>
    %5 = vector.broadcast %4 : vector<32x1xf32> to vector<32x128xf32>
    %6 = arith.addf %3, %5 : vector<32x128xf32>
    %7 = math.tanh %6 : vector<32x128xf32>
    %c0_7 = arith.constant 0 : index
    %c0_8 = arith.constant 0 : index
    %8 = vector.load %arg5[%c0_7, %c0_8] : memref<32x32xf32, #tpu.memory_space<vmem>>, vector<32x32xf32>
    %cst_9 = arith.constant dense<0.000000e+00> : vector<32x128xf32>
    %9 = tpu.matmul %8, %7, %cst_9 {dimension_numbers = #tpu.dot_dimension_numbers<[1], [0], [0], [1], [0, 0, 1, 1], [], []>} : vector<32x32xf32>, vector<32x128xf32>, vector<32x128xf32> -> vector<32x128xf32>
    %c0_10 = arith.constant 0 : index
    %c0_11 = arith.constant 0 : index
    %10 = vector.load %arg6[%c0_10, %c0_11] : memref<32x1xf32, #tpu.memory_space<vmem>>, vector<32x1xf32>
    %11 = vector.broadcast %10 : vector<32x1xf32> to vector<32x128xf32>
    %12 = arith.addf %9, %11 : vector<32x128xf32>
    %13 = math.tanh %12 : vector<32x128xf32>
    %c0_12 = arith.constant 0 : index
    %c0_13 = arith.constant 0 : index
    %14 = vector.load %arg7[%c0_12, %c0_13] : memref<8x32xf32, #tpu.memory_space<vmem>>, vector<8x32xf32>
    %cst_14 = arith.constant dense<0.000000e+00> : vector<8x128xf32>
    %15 = tpu.matmul %14, %13, %cst_14 {dimension_numbers = #tpu.dot_dimension_numbers<[1], [0], [0], [1], [0, 0, 1, 1], [], []>} : vector<8x32xf32>, vector<32x128xf32>, vector<8x128xf32> -> vector<8x128xf32>
    %c0_15 = arith.constant 0 : index
    %c0_16 = arith.constant 0 : index
    %16 = vector.load %arg8[%c0_15, %c0_16] : memref<8x1xf32, #tpu.memory_space<vmem>>, vector<8x1xf32>
    %17 = vector.broadcast %16 : vector<8x1xf32> to vector<8x128xf32>
    %18 = arith.addf %15, %17 : vector<8x128xf32>
    %cst_17 = arith.constant dense<0xFF800000> : vector<128xf32>
    %19 = vector.multi_reduction <maximumf>, %18, %cst_17 [0] : vector<8x128xf32> to vector<128xf32>
    %20 = vector.shape_cast %19 : vector<128xf32> to vector<1x128xf32>
    %21 = vector.broadcast %20 : vector<1x128xf32> to vector<8x128xf32>
    %22 = arith.subf %18, %21 : vector<8x128xf32>
    %23 = math.exp %22 : vector<8x128xf32>
    %cst_18 = arith.constant dense<0.000000e+00> : vector<128xf32>
    %24 = vector.multi_reduction <add>, %23, %cst_18 [0] : vector<8x128xf32> to vector<128xf32>
    %25 = vector.shape_cast %24 : vector<128xf32> to vector<1x128xf32>
    %cst_19 = arith.constant 1.000000e+00 : f32
    %26 = vector.broadcast %cst_19 : f32 to vector<1x128xf32>
    %27 = arith.divf %26, %25 : vector<1x128xf32>
    %28 = math.log %25 : vector<1x128xf32>
    %29 = vector.broadcast %27 : vector<1x128xf32> to vector<8x128xf32>
    %30 = arith.mulf %23, %29 : vector<8x128xf32>
    %31 = arith.mulf %23, %22 : vector<8x128xf32>
    %cst_20 = arith.constant dense<0.000000e+00> : vector<128xf32>
    %32 = vector.multi_reduction <add>, %31, %cst_20 [0] : vector<8x128xf32> to vector<128xf32>
    %33 = vector.shape_cast %32 : vector<128xf32> to vector<1x128xf32>
    %34 = arith.mulf %33, %27 : vector<1x128xf32>
    %35 = arith.subf %28, %34 : vector<1x128xf32>
    %36 = tpu.iota {dimensions = array<i32: 0>} : vector<8x8xi32>
    %37 = tpu.iota {dimensions = array<i32: 1>} : vector<8x8xi32>
    %38 = arith.cmpi sle, %37, %36 : vector<8x8xi32>
    %39 = arith.extui %38 : vector<8x8xi1> to vector<8x8xi32>
    %40 = arith.sitofp %39 : vector<8x8xi32> to vector<8x8xf32>
    %cst_21 = arith.constant dense<0.000000e+00> : vector<8x128xf32>
    %41 = tpu.matmul %40, %30, %cst_21 {dimension_numbers = #tpu.dot_dimension_numbers<[1], [0], [0], [1], [0, 0, 1, 1], [], []>} : vector<8x8xf32>, vector<8x128xf32>, vector<8x128xf32> -> vector<8x128xf32>
    %42 = vector.broadcast %1 : vector<1x128xf32> to vector<8x128xf32>
    %43 = arith.cmpf oge, %42, %41 : vector<8x128xf32>
    %44 = arith.extui %43 : vector<8x128xi1> to vector<8x128xi32>
    %cst_22 = arith.constant dense<0> : vector<128xi32>
    %45 = vector.multi_reduction <add>, %44, %cst_22 [0] : vector<8x128xi32> to vector<128xi32>
    %46 = vector.shape_cast %45 : vector<128xi32> to vector<1x128xi32>
    %c7_i32 = arith.constant 7 : i32
    %47 = vector.broadcast %c7_i32 : i32 to vector<1x128xi32>
    %48 = arith.minsi %46, %47 : vector<1x128xi32>
    %49 = tpu.iota {dimensions = array<i32: 0>} : vector<8x128xi32>
    %50 = vector.broadcast %48 : vector<1x128xi32> to vector<8x128xi32>
    %51 = arith.cmpi eq, %49, %50 : vector<8x128xi32>
    %cst_23 = arith.constant 0xFF800000 : f32
    %52 = vector.broadcast %cst_23 : f32 to vector<8x128xf32>
    %53 = arith.select %51, %22, %52 : vector<8x128xi1>, vector<8x128xf32>
    %cst_24 = arith.constant dense<0xFF800000> : vector<128xf32>
    %54 = vector.multi_reduction <maximumf>, %53, %cst_24 [0] : vector<8x128xf32> to vector<128xf32>
    %55 = vector.shape_cast %54 : vector<128xf32> to vector<1x128xf32>
    %56 = arith.subf %55, %28 : vector<1x128xf32>
    %57 = tpu.transpose %30, [1, 0] : vector<8x128xf32> -> vector<128x8xf32>
    %c0_25 = arith.constant 0 : index
    %c0_26 = arith.constant 0 : index
    %58 = vector.load %arg9[%c0_25, %c0_26] : memref<128x8xf32, #tpu.memory_space<vmem>>, vector<128x8xf32>
    tpu.vector_store %arg9[%c0_25, %c0_26], %57 {strides = array<i32>} : memref<128x8xf32, #tpu.memory_space<vmem>>, vector<128x8xf32>,
    %59 = tpu.iota {dimensions = array<i32: 0>} : vector<8x128xi32>
    %60 = arith.sitofp %48 : vector<1x128xi32> to vector<1x128xf32>
    %c0_i32 = arith.constant 0 : i32
    %61 = vector.broadcast %c0_i32 : i32 to vector<8x128xi32>
    %62 = arith.cmpi eq, %59, %61 : vector<8x128xi32>
    %c1_i32 = arith.constant 1 : i32
    %63 = vector.broadcast %c1_i32 : i32 to vector<8x128xi32>
    %64 = arith.cmpi eq, %59, %63 : vector<8x128xi32>
    %c2_i32 = arith.constant 2 : i32
    %65 = vector.broadcast %c2_i32 : i32 to vector<8x128xi32>
    %66 = arith.cmpi eq, %59, %65 : vector<8x128xi32>
    %cst_27 = arith.constant 0.000000e+00 : f32
    %67 = vector.shape_cast %35 : vector<1x128xf32> to vector<1x128xf32>
    %68 = vector.broadcast %67 : vector<1x128xf32> to vector<8x128xf32>
    %69 = vector.broadcast %cst_27 : f32 to vector<8x128xf32>
    %70 = arith.select %66, %68, %69 : vector<8x128xi1>, vector<8x128xf32>
    %71 = vector.shape_cast %56 : vector<1x128xf32> to vector<1x128xf32>
    %72 = vector.broadcast %71 : vector<1x128xf32> to vector<8x128xf32>
    %73 = arith.select %64, %72, %70 : vector<8x128xi1>, vector<8x128xf32>
    %74 = vector.shape_cast %60 : vector<1x128xf32> to vector<1x128xf32>
    %75 = vector.broadcast %74 : vector<1x128xf32> to vector<8x128xf32>
    %76 = arith.select %62, %75, %73 : vector<8x128xi1>, vector<8x128xf32>
    %c0_28 = arith.constant 0 : index
    %c0_29 = arith.constant 0 : index
    %77 = vector.load %arg10[%c0_28, %c0_29] : memref<8x128xf32, #tpu.memory_space<vmem>>, vector<8x128xf32>
    tpu.vector_store %arg10[%c0_28, %c0_29], %76 {strides = array<i32>} : memref<8x128xf32, #tpu.memory_space<vmem>>, vector<8x128xf32>,
    return
  }
  func.func @transform_0(%arg0: i32) -> (i32, i32) {
    %c0_i32 = arith.constant 0 : i32
    %c0_i32_0 = arith.constant 0 : i32
    return %arg0, %c0_i32 : i32, i32
  }
  func.func @transform_1(%arg0: i32) -> (i32, i32) {
    %c0_i32 = arith.constant 0 : i32
    %c0_i32_0 = arith.constant 0 : i32
    return %c0_i32, %arg0 : i32, i32
  }
  func.func @transform_2(%arg0: i32) -> (i32, i32) {
    %c0_i32 = arith.constant 0 : i32
    %c0_i32_0 = arith.constant 0 : i32
    %c0_i32_1 = arith.constant 0 : i32
    return %c0_i32, %c0_i32_0 : i32, i32
  }
  func.func @transform_3(%arg0: i32) -> (i32, i32) {
    %c0_i32 = arith.constant 0 : i32
    %c0_i32_0 = arith.constant 0 : i32
    %c0_i32_1 = arith.constant 0 : i32
    return %c0_i32, %c0_i32_0 : i32, i32
  }
  func.func @transform_4(%arg0: i32) -> (i32, i32) {
    %c0_i32 = arith.constant 0 : i32
    %c0_i32_0 = arith.constant 0 : i32
    %c0_i32_1 = arith.constant 0 : i32
    return %c0_i32, %c0_i32_0 : i32, i32
  }
  func.func @transform_5(%arg0: i32) -> (i32, i32) {
    %c0_i32 = arith.constant 0 : i32
    %c0_i32_0 = arith.constant 0 : i32
    %c0_i32_1 = arith.constant 0 : i32
    return %c0_i32, %c0_i32_0 : i32, i32
  }
  func.func @transform_6(%arg0: i32) -> (i32, i32) {
    %c0_i32 = arith.constant 0 : i32
    %c0_i32_0 = arith.constant 0 : i32
    %c0_i32_1 = arith.constant 0 : i32
    return %c0_i32, %c0_i32_0 : i32, i32
  }
  func.func @transform_7(%arg0: i32) -> (i32, i32) {
    %c0_i32 = arith.constant 0 : i32
    %c0_i32_0 = arith.constant 0 : i32
    %c0_i32_1 = arith.constant 0 : i32
    return %c0_i32, %c0_i32_0 : i32, i32
  }
  func.func @transform_8(%arg0: i32) -> (i32, i32) {
    %c0_i32 = arith.constant 0 : i32
    %c0_i32_0 = arith.constant 0 : i32
    return %arg0, %c0_i32 : i32, i32
  }
  func.func @transform_9(%arg0: i32) -> (i32, i32) {
    %c0_i32 = arith.constant 0 : i32
    %c0_i32_0 = arith.constant 0 : i32
    return %c0_i32, %arg0 : i32, i32
  }
}

</mosaic_0001>

<bundles_post_ra>
// kernel: action_net_forward.1
= control target key start
LH: loop header
LB: loop body
LE: loop exit
PB: predicated region body
PF: predicated region fallthrough
CT: control target
= control target key end

     0   :  { %s1292_s30 = smov 0   ;;  %s1514_s0 = inlined_call_operand.vmem [shape: f32[256,16], index: 0, kind: input, shape index: {}]   ;;  %s1515_s1 = inlined_call_operand.vmem [shape: f32[1,256], index: 1, kind: input, shape index: {}]   ;;  %s1516_s2 = inlined_call_operand.vmem [shape: f32[32,16], index: 2, kind: input, shape index: {}]   ;;  %s1517_s3 = inlined_call_operand.vmem [shape: f32[32,1], index: 3, kind: input, shape index: {}]   ;;  %s1518_s4 = inlined_call_operand.vmem [shape: f32[32,32], index: 4, kind: input, shape index: {}]   ;;  %s1519_s5 = inlined_call_operand.vmem [shape: f32[32,1], index: 5, kind: input, shape index: {}]   ;;  %s1520_s6 = inlined_call_operand.vmem [shape: f32[8,32], index: 6, kind: input, shape index: {}]   ;;  %s1521_s7 = inlined_call_operand.vmem [shape: f32[8,1], index: 7, kind: input, shape index: {}]   ;;  %s1522_s8 = inlined_call_operand.vmem [shape: f32[256,8], index: 8, kind: output, shape index: {0}]   ;;  %s1523_s9 = inlined_call_operand.vmem [shape: f32[8,256], index: 9, kind: output, shape index: {1}]  }
   0x1 LB: > { %s1298_s10 = sadd.s32 4294967295, %s1237_s30   ;;  %p1057_p0 = scmp.ge.s32.totalorder %s1237_s30, 1  ;;  %s1237_s30 = sphi %s1292_s30, %s20_s30  }
   0x2   : > { %p299_p1 = scmp.lt.s32.totalorder %s1237_s30, 3 }
   0x4   : > { %p300_p2 = pnand %p1057_p0, %p299_p1 }
   0x5   : > { %s1058_s11 = sshll.u32 (!%p300_p2), %s1298_s10, 4  ;;  %p348_p4 = scmp.lt.s32.totalorder (!%p300_p2), %s1298_s10, 1 }
   0x6   : > { %303 = sbr.rel (%p300_p2) target bundleno = 1002 (0x3ea), region = 52  ;;  %p343_p3 = scmp.lt.s32.totalorder (!%p300_p2), %s1058_s11, 31 }
   0xb   : > { %vm406_vm0 = vcmask 130048   ;;  %v378_v0 = vld [vmem:[%s1516_s2] sm:$0xff]  ;;  %v1239_v1 = vmov 0   ;;  %v385_v2 = vld [vmem:[%s1517_s3 + $0x18] sm:$0xff]  ;;  %v383_v3 = vld [vmem:[%s1517_s3 + $0x8] sm:$0xff]  ;;  %s1525_s11 = smov (!%p343_p3, %s1058_s11), 31 }
   0xc   : > { %1160 = vmatprep.mubr.msk.f32.mxu0 %vm406_vm0, %v378_v0  ;;  %1207 = vset.pattern.permute.xlu0 %v1239_v1  ;;  %v384_v4 = vld [vmem:[%s1517_s3 + $0x10] sm:$0xff]  ;;  %v382_v5 = vld [vmem:[%s1517_s3] sm:$0xff]  ;;  %s1059_s22 = sshll.u32 %s1525_s11, 3  ;;  %v563_v8 = vld [vmem:[%s1519_s5 + $0x18] sm:$0xff]  ;;  %vm584_vm1 = vcmask 261120   ;;  %v1240_v50 = vmov 0.0  }
   0xd   : > { %403 = vperm.xlu0 %1207, %v385_v2   ;;  %1208 = vset.pattern.permute.xlu1 %v1239_v1  ;;  %s1329_s25 = scalar_lea.vmem %s1514_s0, %s1059_s22  ;;  %v562_v9 = vld [vmem:[%s1519_s5 + $0x10] sm:$0xff]  ;;  %v561_v11 = vld [vmem:[%s1519_s5 + $0x8] sm:$0xff]  ;;  %v560_v12 = vld [vmem:[%s1519_s5] sm:$0xff]  ;;  %vm1241_vm2 = vmmov 0   ;;  %vm802_vm4 = vcmask 64512   ;;  %s1455_s19 = scalar_lea.vmem %s1522_s8, %s1059_s22 }
   0xe   : > { %393 = vperm.xlu1 %1208, %v383_v3   ;;  %v376_v6 = vld [vmem:[%s1329_s25 + $0x78] sm:$0xff]  ;;  %v375_v7 = vld [vmem:[%s1329_s25 + $0x70] sm:$0xff]  ;;  %v374_v10 = vld [vmem:[%s1329_s25 + $0x68] sm:$0xff]  ;;  %s1527_s10 = smov (!%p348_p4, %s1298_s10), 1 }
   0xf   : > { %1128 = vmatprep.subr.msk.mxu0 %vm406_vm0, %v376_v6  ;;  %v373_v13 = vld [vmem:[%s1329_s25 + $0x60] sm:$0xff]  ;;  %v372_v15 = vld [vmem:[%s1329_s25 + $0x58] sm:$0xff]  ;;  %v371_v16 = vld [vmem:[%s1329_s25 + $0x50] sm:$0xff]  ;;  %s350_s20 = scalar_lea.vmem %s1515_s1, %s1527_s10  ;;  %s1062_s21 = sshll.u32 %s1527_s10, 3 }
  0x10   : > { %1129 = vmatpush3.xpose.msk.msra.mxu0 %vm406_vm0, %v376_v6  ;;  %v687_v14 = vld [vmem:[%s1521_s7] sm:$0xff]  ;;  %v370_v17 = vld [vmem:[%s1329_s25 + $0x48] sm:$0xff]  ;;  %v368_v19 = vld [vmem:[%s1329_s25 + $0x38] sm:$0xff] }
  0x11   : > { %398 = vperm.xlu0 %1207, %v384_v4   ;;  %1130 = vmatprep.subr.msk.mxu0 %vm406_vm0, %v375_v7  ;;  %v369_v18 = vld [vmem:[%s1329_s25 + $0x40] sm:$0xff]  ;;  %v367_v20 = vld [vmem:[%s1329_s25 + $0x30] sm:$0xff]  ;;  %v366_v21 = vld [vmem:[%s1329_s25 + $0x28] sm:$0xff] }
  0x12   : > { %388 = vperm.xlu1 %1208, %v382_v5   ;;  %v365_v22 = vld [vmem:[%s1329_s25 + $0x20] sm:$0xff]  ;;  %v364_v23 = vld [vmem:[%s1329_s25 + $0x18] sm:$0xff]  ;;  %v363_v24 = vld [vmem:[%s1329_s25 + $0x10] sm:$0xff] }
  0x13   : > { %v362_v25 = vld [vmem:[%s1329_s25 + $0x8] sm:$0xff]  ;;  %v361_v26 = vld [vmem:[%s1329_s25] sm:$0xff]  ;;  %v380_v28 = vld [vmem:[%s1516_s2 + $0x10] sm:$0xff]  ;;  %s360_s25 = scalar_lea.vmem %s1523_s9, %s1062_s21 }
  0x14   : > { %1131 = vmatpush3.xpose.msk.msra.mxu0 %vm406_vm0, %v375_v7  ;;  %v379_v27 = vld [vmem:[%s1516_s2 + $0x8] sm:$0xff]  ;;  %v381_v29 = vld [vmem:[%s1516_s2 + $0x18] sm:$0xff]  ;;  %v556_v30 = vld [vmem:[%s1518_s4] sm:$0xff] }
  0x15   : > { %581 = vperm.xlu0 %1207, %v563_v8   ;;  %1132 = vmatprep.subr.msk.mxu0 %vm406_vm0, %v374_v10  ;;  %v557_v47 = vld [vmem:[%s1518_s4 + $0x8] sm:$0xff]  ;;  %v558_v48 = vld [vmem:[%s1518_s4 + $0x10] sm:$0xff]  ;;  %v559_v49 = vld [vmem:[%s1518_s4 + $0x18] sm:$0xff] }
  0x16   : > { %576 = vperm.xlu1 %1208, %v562_v9   ;;  %1174 = vmatprep.mubr.msk.f32.mxu1 %vm584_vm1, %v556_v30  ;;  %v686_v3 = vld [vmem:[%s1520_s6] sm:$0xff] }
  0x18   : > { %1133 = vmatpush3.xpose.msk.msra.mxu0 %vm406_vm0, %v374_v10 }
  0x19   : > { %571 = vperm.xlu0 %1207, %v561_v11   ;;  %1134 = vmatprep.subr.msk.mxu0 %vm406_vm0, %v373_v13 }
  0x1a   : > { %566 = vperm.xlu1 %1208, %v560_v12  }
  0x1c   : > { %1135 = vmatpush3.xpose.msk.msra.mxu0 %vm406_vm0, %v373_v13 }
  0x1d   : > { %690 = vperm.xlu0 %1207, %v687_v14   ;;  %1136 = vmatprep.subr.msk.mxu0 %vm406_vm0, %v372_v15 }
  0x20   : > { %1137 = vmatpush3.xpose.msk.msra.mxu0 %vm406_vm0, %v372_v15 }
  0x21   : > { %1138 = vmatprep.subr.msk.mxu0 %vm406_vm0, %v371_v16 }
  0x24   : > { %1139 = vmatpush3.xpose.msk.msra.mxu0 %vm406_vm0, %v371_v16 }
  0x25   : > { %1140 = vmatprep.subr.msk.mxu0 %vm406_vm0, %v370_v17 }
  0x28   : > { %1141 = vmatpush3.xpose.msk.msra.mxu0 %vm406_vm0, %v370_v17 }
  0x29   : > { %1142 = vmatprep.subr.msk.mxu0 %vm406_vm0, %v369_v18 }
  0x2c   : > { %1143 = vmatpush3.xpose.msk.msra.mxu0 %vm406_vm0, %v369_v18 }
  0x2d   : > { %1144 = vmatprep.subr.msk.mxu0 %vm406_vm0, %v368_v19 }
  0x30   : > { %1145 = vmatpush3.xpose.msk.msra.mxu0 %vm406_vm0, %v368_v19 }
  0x31   : > { %1146 = vmatprep.subr.msk.mxu0 %vm406_vm0, %v367_v20 }
  0x34   : > { %1147 = vmatpush3.xpose.msk.msra.mxu0 %vm406_vm0, %v367_v20 }
  0x35   : > { %1148 = vmatprep.subr.msk.mxu0 %vm406_vm0, %v366_v21 }
  0x38   : > { %1149 = vmatpush3.xpose.msk.msra.mxu0 %vm406_vm0, %v366_v21 }
  0x39   : > { %1150 = vmatprep.subr.msk.mxu0 %vm406_vm0, %v365_v22 }
  0x3c   : > { %1151 = vmatpush3.xpose.msk.msra.mxu0 %vm406_vm0, %v365_v22 }
  0x3d   : > { %1152 = vmatprep.subr.msk.mxu0 %vm406_vm0, %v364_v23 }
  0x40   : > { %1153 = vmatpush3.xpose.msk.msra.mxu0 %vm406_vm0, %v364_v23 }
  0x41   : > { %1154 = vmatprep.subr.msk.mxu0 %vm406_vm0, %v363_v24 }
  0x44   : > { %1155 = vmatpush3.xpose.msk.msra.mxu0 %vm406_vm0, %v363_v24 }
  0x45   : > { %1156 = vmatprep.subr.msk.mxu0 %vm406_vm0, %v362_v25 }
  0x48   : > { %1157 = vmatpush3.xpose.msk.msra.mxu0 %vm406_vm0, %v362_v25 }
  0x49   : > { %1158 = vmatprep.subr.msk.mxu0 %vm406_vm0, %v361_v26 }
  0x4c   : > { %1159 = vmatpush3.xpose.msk.msra.mxu0 %vm406_vm0, %v361_v26 }
  0x4f   : > { %1161 = vmatmul.mubr.msk.f32.vlgmr.msra.gmra.mxu0 %vm406_vm0, %v379_v27 }
  0x50   : > { %1163 = vmatprep.mubr.msk.f32.mxu0 %vm406_vm0, %v380_v28  ;;  %v795_v28 = vlaneseq }
  0x52   : > { %v1439_v30 = vshrl.u32 %v795_v28, 7 }
  0x53   : > { %1164 = vmatmul.mubr.msk.f32.gmra.mxu0 %vm406_vm0, %v381_v29 }
  0x54   : > { %vm952_vm8 = vcmp.eq.s32.totalorder %v1439_v30, 2  ;;  %vm951_vm9 = vcmp.eq.s32.totalorder %v1439_v30, 1  ;;  %vm950_vm10 = vcmp.eq.s32.totalorder %v1439_v30, 0 }
  0x88   : > { %v404_v31 = vpop.permute.xlu0 %403 }
  0x89   : > { %v394_v33 = vpop.permute.xlu1 %393 }
  0x8c   : > { %v399_v37 = vpop.permute.xlu0 %398 }
  0x8d   : > { %v389_v41 = vpop.permute.xlu1 %388 }
  0x90   : > { %v582_v51 = vpop.permute.xlu0 %581 }
  0x91   : > { %v577_v53 = vpop.permute.xlu1 %576 }
  0x94   : > { %v572_v57 = vpop.permute.xlu0 %571 }
  0x95   : > { %v567_v61 = vpop.permute.xlu1 %566 }
  0x98   : > { %v691_v5 = vpop.permute.xlu0 %690 }
 0x10f   : > { %v1162_v32 = vpop.f32.mrf.mxu0 }
 0x110   : > { %v539_v39 = vadd.f32 %v1162_v32, %v394_v33 }
 0x111   : > { %v533_v34 = vpop.f32.mrf.mxu0 }
 0x112   : > { %v534_v42 = vadd.f32 %v533_v34, %v389_v41 }
 0x113   : > { %v1165_v35 = vpop.f32.mrf.mxu0 }
 0x114   : > { %v549_v36 = vadd.f32 %v1165_v35, %v404_v31  ;;  %v798_v31 = vand.u32 127, %v795_v28 }
 0x115   : > { %v543_v38 = vpop.f32.mrf.mxu0 }
 0x116   : > { %1209 = vtanh.f32 %v549_v36  ;;  %v544_v40 = vadd.f32 %v543_v38, %v399_v37  ;;  %vm799_vm3 = vcmp.le.s32.totalorder %v798_v31, %v1439_v30 }
 0x117   : > { %v1088_v37 = vsel %vm799_vm3, 1.0, %v1240_v50 }
 0x118   : > { %1211 = vtanh.f32 %v544_v40 }
 0x119   : > { %1213 = vtanh.f32 %v539_v39 }
 0x11a   : > { %1215 = vtanh.f32 %v534_v42 }
 0x123   : > { %v1210_v43 = vpop.eup %1209 }
 0x124   : > { %1166 = vmatprep.subr.mxu1 %v1210_v43 }
 0x125   : > { %v1212_v44 = vpop.eup %1211  ;;  %1167 = vmatpush3.msra.mxu1 %v1210_v43 }
 0x126   : > { %1168 = vmatprep.subr.mxu1 %v1212_v44  ;;  %v1214_v45 = vpop.eup %1213 }
 0x127   : > { %1169 = vmatpush3.msra.mxu1 %v1212_v44  ;;  %v1216_v46 = vpop.eup %1215 }
 0x128   : > { %1170 = vmatprep.subr.mxu1 %v1214_v45 }
 0x129   : > { %1171 = vmatpush3.msra.mxu1 %v1214_v45 }
 0x12a   : > { %1172 = vmatprep.subr.mxu1 %v1216_v46 }
 0x12b   : > { %1173 = vmatpush3.msra.mxu1 %v1216_v46 }
 0x12c   : > { %1175 = vmatmul.mubr.msk.f32.vlgmr.msra.gmra.mxu1 %vm584_vm1, %v557_v47  ;;  %1180 = vmatprep.subr.mxu1 %v1240_v50 }
 0x12d   : > { %1177 = vmatprep.mubr.msk.f32.mxu1 %vm584_vm1, %v558_v48 }
 0x130   : > { %1178 = vmatmul.mubr.msk.f32.gmra.mxu1 %vm584_vm1, %v559_v49 }
 0x131   : > { %1188 = vmatprep.mubr.msk.f32.mxu1 %vm1241_vm2, %v1240_v50 }
 0x1ec   : > { %v1176_v52 = vpop.f32.mrf.mxu1 }
 0x1ed   : > { %v669_v59 = vadd.f32 %v1176_v52, %v572_v57  ;;  %v1090_v57 = vld [vmem:[%s350_s20] ss:$0 sm:$0xff] }
 0x1ee   : > { %v663_v54 = vpop.f32.mrf.mxu1 }
 0x1ef   : > { %v664_v62 = vadd.f32 %v663_v54, %v567_v61 }
 0x1f0   : > { %v1179_v55 = vpop.f32.mrf.mxu1 }
 0x1f1   : > { %v679_v56 = vadd.f32 %v1179_v55, %v582_v51 }
 0x1f2   : > { %v673_v58 = vpop.f32.mrf.mxu1 }
 0x1f3   : > { %1217 = vtanh.f32 %v679_v56  ;;  %v674_v60 = vadd.f32 %v673_v58, %v577_v53 }
 0x1f5   : > { %1219 = vtanh.f32 %v674_v60 }
 0x1f6   : > { %1221 = vtanh.f32 %v669_v59 }
 0x1f7   : > { %1223 = vtanh.f32 %v664_v62 }
 0x200   : > { %v1218_v63 = vpop.eup %1217 }
 0x201   : > { %1181 = vmatpush3.msra.mxu1 %v1218_v63 }
 0x202   : > { %v1220_v0 = vpop.eup %1219  ;;  %1182 = vmatprep.subr.mxu1 %v1240_v50 }
 0x203   : > { %1183 = vmatpush3.msra.mxu1 %v1220_v0  ;;  %v1222_v2 = vpop.eup %1221 }
 0x204   : > { %1184 = vmatprep.subr.mxu1 %v1240_v50  ;;  %v1224_v4 = vpop.eup %1223 }
 0x205   : > { %1185 = vmatpush3.msra.mxu1 %v1222_v2 }
 0x206   : > { %1186 = vmatprep.subr.mxu1 %v1240_v50 }
 0x207   : > { %1187 = vmatpush3.msra.mxu1 %v1224_v4 }
 0x208   : > { %1189 = vmatmul.mubr.msk.f32.vlgmr.msra.gmra.mxu1 %vm584_vm1, %v686_v3  ;;  %1191 = vmatprep.subr.mxu1 %v1240_v50 }
 0x209   : > { %1193 = vmatprep.mubr.msk.f32.mxu1 %vm1241_vm2, %v1240_v50 }
 0x2c8   : > { %v762_v6 = vpop.f32.mrf.mxu1 }
 0x2c9   : > { %v763_v7 = vadd.f32 %v762_v6, %v691_v5 }
 0x2ca   : > { %v1190_v8 = vpop.f32.mrf.mxu1 }
 0x2cb   : > { %v766_v9 = vrot.slane %v763_v7, 4 }
 0x2cd   : > { %v767_v10 = vmax.f32 %v763_v7, %v766_v9 }
 0x2cf   : > { %v768_v11 = vrot.slane %v767_v10, 2 }
 0x2d1   : > { %v769_v12 = vmax.f32 %v767_v10, %v768_v11 }
 0x2d3   : > { %v770_v13 = vrot.slane %v769_v12, 1 }
 0x2d5   : > { %v771_v14 = vmax.f32 %v769_v12, %v770_v13 }
 0x2d7   : > { %v1435_v15 = vsub.f32 %v763_v7, %v771_v14 }
 0x2d9   : > { %v773_v16 = vmul.f32 1.442695, %v1435_v15 }
 0x2db   : > { %1225 = vpow2.f32 %v773_v16 }
 0x2e8   : > { %v1226_v17 = vpop.eup %1225 }
 0x2e9   : > { %v786_v18 = vmul.f32 %v1226_v17, %v1435_v15  ;;  %v775_v19 = vrot.slane %v1226_v17, 4 }
 0x2eb   : > { %v776_v20 = vadd.f32 %v1226_v17, %v775_v19  ;;  %v787_v21 = vrot.slane %v786_v18, 4 }
 0x2ed   : > { %v777_v22 = vrot.slane %v776_v20, 2  ;;  %v788_v24 = vadd.f32 %v787_v21, %v786_v18 }
 0x2ef   : > { %v778_v23 = vadd.f32 %v777_v22, %v776_v20  ;;  %v789_v27 = vrot.slane %v788_v24, 2 }
 0x2f1   : > { %v779_v25 = vrot.slane %v778_v23, 1  ;;  %v790_v29 = vadd.f32 %v789_v27, %v788_v24 }
 0x2f3   : > { %v780_v26 = vadd.f32 %v779_v25, %v778_v23  ;;  %v791_v32 = vrot.slane %v790_v29, 1 }
 0x2f5   : > { %1227 = vrcp.f32 %v780_v26  ;;  %v792_v33 = vadd.f32 %v791_v32, %v790_v29 }
 0x2f6   : > { %1229 = vlog2.f32 %v780_v26 }
 0x302   : > { %v1228_v34 = vpop.eup %1227 }
 0x303   : > { %v1230_v35 = vpop.eup %1229  ;;  %v785_v36 = vmul.f32 %v1228_v34, %v1226_v17  ;;  %v1443_v38 = vmul.f32 %v1228_v34, %v792_v33 }
 0x304   : > { %v1445_v39 = vmul.f32 0.6931472, %v1230_v35 }
 0x305   : > { %901 = vxpose.xlu1.b32.start.end [1/1] (short) %v785_v36, 128  ;;  %1192 = vmatpush3.msra.mxu1 %v785_v36 }
 0x306   : > { %1194 = vmatmul.mubr.msk.f32.vlgmr.msra.gmra.mxu1 %vm802_vm4, %v1088_v37  ;;  %v794_v40 = vsub.f32 %v1445_v39, %v1443_v38 }
 0x308   : > { %v953_v13 = vsel %vm952_vm8, %v794_v40, 0.0 }
 0x381   : > { %v917_v41 = vpop.trf.xlu1 }
 0x382   : > { %933 = vst.msk [vmem:[%s1455_s19] sm:$0xff] %vm802_vm4, %v917_v41 }
 0x385   : > { %v918_v42 = vpop.trf.xlu1 }
 0x386   : > { %934 = vst.msk [vmem:[%s1455_s19 + $0x8] sm:$0xff] %vm802_vm4, %v918_v42 }
 0x389   : > { %v919_v43 = vpop.trf.xlu1 }
 0x38a   : > { %935 = vst.msk [vmem:[%s1455_s19 + $0x10] sm:$0xff] %vm802_vm4, %v919_v43 }
 0x38d   : > { %v920_v44 = vpop.trf.xlu1 }
 0x38e   : > { %936 = vst.msk [vmem:[%s1455_s19 + $0x18] sm:$0xff] %vm802_vm4, %v920_v44 }
 0x391   : > { %v921_v45 = vpop.trf.xlu1 }
 0x392   : > { %937 = vst.msk [vmem:[%s1455_s19 + $0x20] sm:$0xff] %vm802_vm4, %v921_v45 }
 0x395   : > { %v922_v46 = vpop.trf.xlu1 }
 0x396   : > { %938 = vst.msk [vmem:[%s1455_s19 + $0x28] sm:$0xff] %vm802_vm4, %v922_v46 }
 0x399   : > { %v923_v47 = vpop.trf.xlu1 }
 0x39a   : > { %939 = vst.msk [vmem:[%s1455_s19 + $0x30] sm:$0xff] %vm802_vm4, %v923_v47 }
 0x39d   : > { %v924_v48 = vpop.trf.xlu1 }
 0x39e   : > { %940 = vst.msk [vmem:[%s1455_s19 + $0x38] sm:$0xff] %vm802_vm4, %v924_v48 }
 0x3a1   : > { %v925_v49 = vpop.trf.xlu1 }
 0x3a2   : > { %941 = vst.msk [vmem:[%s1455_s19 + $0x40] sm:$0xff] %vm802_vm4, %v925_v49 }
 0x3a5   : > { %v926_v50 = vpop.trf.xlu1 }
 0x3a6   : > { %942 = vst.msk [vmem:[%s1455_s19 + $0x48] sm:$0xff] %vm802_vm4, %v926_v50 }
 0x3a9   : > { %v927_v51 = vpop.trf.xlu1 }
 0x3aa   : > { %943 = vst.msk [vmem:[%s1455_s19 + $0x50] sm:$0xff] %vm802_vm4, %v927_v51 }
 0x3ad   : > { %v928_v52 = vpop.trf.xlu1 }
 0x3ae   : > { %944 = vst.msk [vmem:[%s1455_s19 + $0x58] sm:$0xff] %vm802_vm4, %v928_v52 }
 0x3b1   : > { %v929_v53 = vpop.trf.xlu1 }
 0x3b2   : > { %945 = vst.msk [vmem:[%s1455_s19 + $0x60] sm:$0xff] %vm802_vm4, %v929_v53 }
 0x3b5   : > { %v930_v54 = vpop.trf.xlu1 }
 0x3b6   : > { %946 = vst.msk [vmem:[%s1455_s19 + $0x68] sm:$0xff] %vm802_vm4, %v930_v54 }
 0x3b9   : > { %v931_v55 = vpop.trf.xlu1 }
 0x3ba   : > { %947 = vst.msk [vmem:[%s1455_s19 + $0x70] sm:$0xff] %vm802_vm4, %v931_v55 }
 0x3bd   : > { %v932_v56 = vpop.trf.xlu1 }
 0x3be   : > { %948 = vst.msk [vmem:[%s1455_s19 + $0x78] sm:$0xff] %vm802_vm4, %v932_v56 }
 0x3c6   : > { %v872_v58 = vpop.f32.mrf.mxu1 }
 0x3c7   : > { %vm882_vm5 = vcmp.ge.f32.partialorder %v1090_v57, %v872_v58 }
 0x3c8   : > { %v883_v59 = vsel %vm882_vm5, 1, %v1239_v1  ;;  %v1195_v60 = vpop.f32.mrf.mxu1 }
 0x3c9   : > { %v884_v61 = vrot.slane %v883_v59, 4 }
 0x3cb   : > { %v885_v62 = vadd.s32 %v884_v61, %v883_v59 }
 0x3cd   : > { %v886_v63 = vrot.slane %v885_v62, 2 }
 0x3cf   : > { %v887_v0 = vadd.s32 %v886_v63, %v885_v62 }
 0x3d1   : > { %v888_v2 = vrot.slane %v887_v0, 1 }
 0x3d3   : > { %v889_v3 = vadd.s32 %v888_v2, %v887_v0 }
 0x3d5   : > { %vm890_vm6 = vcmp.lt.s32.totalorder %v889_v3, 7 }
 0x3d6   : > { %v891_v4 = vsel %vm890_vm6, %v889_v3, 7 }
 0x3d7   : > { %vm892_vm7 = vcmp.eq.s32.totalorder %v1439_v30, %v891_v4  ;;  %v949_v12 = vcvt.s32.f32 %v891_v4 }
 0x3d8   : > { %v893_v5 = vsel %vm892_vm7, %v1435_v15, -inf }
 0x3d9   : > { %v894_v6 = vrot.slane %v893_v5, 4 }
 0x3db   : > { %v895_v7 = vmax.f32 %v893_v5, %v894_v6 }
 0x3dd   : > { %v896_v8 = vrot.slane %v895_v7, 2 }
 0x3df   : > { %v897_v9 = vmax.f32 %v895_v7, %v896_v8 }
 0x3e1   : > { %v898_v10 = vrot.slane %v897_v9, 1 }
 0x3e3   : > { %v899_v1 = vmax.f32 %v897_v9, %v898_v10 }
 0x3e5   : > { %v900_v11 = vsub.f32 %v899_v1, %v1445_v39 }
 0x3e7   : > { %v954_v14 = vsel %vm951_vm9, %v900_v11, %v953_v13 }
 0x3e8   : > { %v955_v15 = vsel %vm950_vm10, %v949_v12, %v954_v14 }
 0x3e9   : > { %956 = vst [vmem:[%s360_s25] sm:$0xff] %v955_v15 }
 0x3ea PF: > { %s20_s30 = sadd.s32 1, %s1237_s30  }
 0x3eb   : > { %p17_p5 = scmp.ge.s32.totalorder %s20_s30, 4  }
 0x3ed   :  { %19 = sbr.rel (!%p17_p5) target bundleno = 1 (0x1), region = 97 }

</bundles_post_ra>
